<compile_context>
chip_gen: v7x
topology: tpu7x:2x2x1
jax: 0.10.0
libtpu: 0.0.40
codegen_flags: <defaults>
</compile_context>

<pallas_src>
import functools
import math

import jax
import jax.numpy as jnp
from jax import lax
from jax.experimental import pallas as pl
from jax.experimental.pallas import tpu as pltpu


def _round_up(x, m):
    return (x + m - 1) // m * m


def _pick_cout_tile(Cout, Cpg):
    """Largest divisor of Cout that is group-aligned (mult of Cpg), sublane
    aligned (mult of 8) and <= 256 (fills MXU rows on v6e/v7x)."""
    align = (Cpg * 8) // math.gcd(Cpg, 8)          # lcm(Cpg, 8)
    best = None
    c = align
    while c <= Cout and c <= 256:
        if Cout % c == 0:
            best = c
        c += align
    return best if best is not None else Cout


def _pick_batch_block(N, per_sample_bytes, fixed_bytes, budget=24 << 20):
    """VMEM-aware batch folding: amortize the ~0.35us/step pipeline overhead
    while keeping double-buffered I/O + scratch + f32 temps under a budget that
    fits v7x's 64 MiB VMEM (and leaves room everywhere else)."""
    for nb in (8, 4, 2):
        if (N % nb == 0 and N // nb >= 2
                and fixed_bytes + 2 * nb * per_sample_bytes <= budget):
            return nb
    return 1


def _conv_gn_act_kernel(x_ref, w_ref, g_ref, b_ref, gmat_ref, o_ref,
                        buf_ref, patch_ref, *,
                        H, W, Cin, Cin_p, Cpg, eps, nb, zp, two_pass):
    # x_ref    : (nb, Cin, H*W)        input, spatial flattened onto the lane dim
    # w_ref    : (ct, 9*Cin_p)         conv weight tile, cols ordered (kh, kw, ci)
    # g_ref    : (ct, 1)  b_ref:(ct,1) GroupNorm gamma / beta (f32)
    # gmat_ref : (ct, ct)              same-group indicator (f32, precomputed)
    # o_ref    : (nb, ct, H*W)         lane-dense f32 output block
    # buf_ref  : (Cin_p, H*W + 2*zp)   zero-margined image scratch (MXU dtype)
    # patch_ref: (9*Cin_p, H*W)        im2col patch scratch (MXU dtype)
    HW = H * W
    f32 = jnp.float32

    # Zero only the margins + padded channel rows (the [0:Cin, zp:zp+HW] window
    # is rewritten every sample).  Deliberately NOT hoisted under
    # pl.when(program_id == 0): with "parallel" axes + megacore, the second
    # TensorCore never runs program_id 0.
    buf_ref[:, 0:zp] = jnp.zeros((Cin_p, zp), buf_ref.dtype)
    buf_ref[:, zp + HW:zp + HW + zp] = jnp.zeros((Cin_p, zp), buf_ref.dtype)
    if Cin_p > Cin:
        buf_ref[Cin:Cin_p, zp:zp + HW] = jnp.zeros((Cin_p - Cin, HW), buf_ref.dtype)

    w2 = w_ref[...]                                   # (ct, 9*Cin_p) MXU dtype
    gamma = g_ref[...]                                # (ct, 1) f32
    beta = b_ref[...]                                 # (ct, 1) f32
    gmat = gmat_ref[...]                              # (ct, ct) f32

    # Per-lane column (w coordinate) masks for the horizontal edge taps,
    # hoisted out of the sample loop (vertical OOB taps hit the zero margins).
    w_idx = lax.broadcasted_iota(jnp.int32, (Cin_p, HW), 1) % W
    not_last_col = w_idx < (W - 1)                    # valid to read (w + 1)
    not_first_col = w_idx > 0                         # valid to read (w - 1)

    inv_cnt = 1.0 / float(HW * Cpg)

    def body(s, carry):
        buf_ref[0:Cin, zp:zp + HW] = x_ref[s]         # aligned, lane-dense store

        # --- 3x3 conv (stride 1, pad 1) as ONE matmul over an in-VMEM im2col
        #     patch: 9 lane-shifted slices of the zero-margined buffer, stored
        #     directly into the patch scratch (no concatenate temporary).
        for kh in range(3):
            for kw in range(3):
                start = zp + (kh - 1) * W + (kw - 1)
                t = buf_ref[:, start:start + HW]      # (Cin_p, HW)
                if kw == 2:
                    t = jnp.where(not_last_col, t, jnp.zeros_like(t))
                elif kw == 0:
                    t = jnp.where(not_first_col, t, jnp.zeros_like(t))
                base = (kh * 3 + kw) * Cin_p
                patch_ref[base:base + Cin_p, :] = t

        # bf16 operands, f32 accumulation on the MXU.
        acc = jnp.dot(w2, patch_ref[...], preferred_element_type=f32)  # (ct, HW)

        # --- GroupNorm(8): per-sample per-group stats.  Heavy reductions are
        #     cross-lane sums; the group reduce+broadcast is one tiny dot with
        #     the precomputed indicator matrix.
        if two_pass:
            s1 = jnp.sum(acc, axis=1, keepdims=True)                       # (ct,1)
            mean_c = jnp.dot(gmat, s1, preferred_element_type=f32) * inv_cnt
            centered = acc - mean_c
            s2 = jnp.sum(centered * centered, axis=1, keepdims=True)
            var_c = jnp.dot(gmat, s2, preferred_element_type=f32) * inv_cnt
        else:
            # Single-pass E[x^2]-E[x]^2 variant: one read of acc, one tiny dot.
            s1 = jnp.sum(acc, axis=1, keepdims=True)
            s2 = jnp.sum(acc * acc, axis=1, keepdims=True)
            st = jnp.dot(gmat, jnp.concatenate([s1, s2], axis=1),
                         preferred_element_type=f32) * inv_cnt             # (ct,2)
            mean_c = st[:, 0:1]
            var_c = st[:, 1:2] - mean_c * mean_c
            centered = acc - mean_c
        inv_c = lax.rsqrt(var_c + eps)

        # Post-matmul elementwise math kept in f32 (v5e has no bf16 VPU/EUP).
        y = centered * (inv_c * gamma) + beta

        # --- Dropout(p=0.2): module evaluated in inference mode -> identity ---
        # TODO(synk): training-mode inverted dropout via pltpu.prng_seed /
        # pltpu.stateful_bernoulli if train-time semantics are ever required.

        # --- SiLU ---
        y = y * jax.nn.sigmoid(y)

        o_ref[s] = y.astype(o_ref.dtype)              # lane-dense (ct, HW) store
        return carry

    # fori_loop (not a static Python for) bounds live ranges across samples.
    lax.fori_loop(0, nb, body, 0, unroll=2 if nb >= 2 else 1)


def conv_gn_drop_act(x_nchw, w_oihw, gamma, beta, *, num_groups=8, eps=1e-5,
                     mxu_dtype=jnp.bfloat16, two_pass_gn=True):
    """PyTorch-equivalent forward of ConvGnDropAct (eval mode). NCHW in / NCHW out."""
    N, Cin, H, W = x_nchw.shape
    Cout = w_oihw.shape[0]
    assert Cout % num_groups == 0
    HW = H * W
    Cpg = Cout // num_groups
    itemsize = jnp.dtype(mxu_dtype).itemsize

    # Channel rows rounded to a packing-friendly sublane multiple.
    sub = 16 if itemsize == 2 else 8
    Cin_p = _round_up(Cin, sub)
    zp = _round_up(W + 1, 128)           # zero lane margin (keeps stores aligned)

    # Group-aligned Cout tile -> second "parallel" grid axis: GN groups never
    # cross tiles, so tiles are fully independent (feeds both v7x TensorCores
    # even at small N, shrinks per-step blocks for v7x's 64 MiB VMEM).
    ct = _pick_cout_tile(Cout, Cpg)
    n_ct = Cout // ct

    # VMEM-aware batch folding + explicit scoped-VMEM limit.
    per_sample = Cin * HW * itemsize + ct * HW * 4
    fixed = ((Cin_p * (HW + 2 * zp) + 9 * Cin_p * HW) * itemsize   # scratches
             + ct * 9 * Cin_p * itemsize + ct * ct * 4             # weights/gmat
             + 4 * ct * HW * 4)                                    # f32 temps
    nb = _pick_batch_block(N, per_sample, fixed)
    vmem_limit = int(min(48 << 20, max(32 << 20, 2 * (fixed + 2 * nb * per_sample))))

    # Layout glue: NO transposes / NO activation padding in the wrapper; the
    # reshape is metadata-only.  Activations narrowed to the MXU dtype (halves
    # HBM DMA); output stays f32.
    x_flat = x_nchw.reshape(N, Cin, HW).astype(mxu_dtype)
    # Conv weight -> (Cout, 9*Cin_p), columns ordered (kh, kw, ci); pad the tiny
    # weight (never the activation) when Cin is not a sublane multiple.
    w_p = w_oihw
    if Cin_p != Cin:
        w_p = jnp.pad(w_oihw, ((0, 0), (0, Cin_p - Cin), (0, 0), (0, 0)))
    w2 = jnp.transpose(w_p, (0, 2, 3, 1)).reshape(Cout, 9 * Cin_p).astype(mxu_dtype)
    g2 = gamma.reshape(Cout, 1).astype(jnp.float32)
    b2 = beta.reshape(Cout, 1).astype(jnp.float32)
    # Same-group indicator for ONE Cout tile (identical for every group-aligned
    # tile) -- precomputed so the kernel never rebuilds a (Cout, Cout) matrix.
    gidx = jnp.arange(ct) // Cpg
    gmat = (gidx[:, None] == gidx[None, :]).astype(jnp.float32)

    kernel = functools.partial(
        _conv_gn_act_kernel, H=H, W=W, Cin=Cin, Cin_p=Cin_p, Cpg=Cpg,
        eps=eps, nb=nb, zp=zp, two_pass=two_pass_gn)

    # TODO(synk): if H*W is not a multiple of 128 for target shapes, band H into
    # lane-dense row tiles with partial GN sums so output stores stay unmasked.
    out_flat = pl.pallas_call(
        kernel,
        out_shape=jax.ShapeDtypeStruct((N, Cout, HW), jnp.float32),
        grid_spec=pltpu.PrefetchScalarGridSpec(
            num_scalar_prefetch=0,
            grid=(N // nb, n_ct),
            in_specs=[
                pl.BlockSpec((nb, Cin, HW), lambda n, c: (n, 0, 0)),
                pl.BlockSpec((ct, 9 * Cin_p), lambda n, c: (c, 0)),
                pl.BlockSpec((ct, 1), lambda n, c: (c, 0)),
                pl.BlockSpec((ct, 1), lambda n, c: (c, 0)),
                pl.BlockSpec((ct, ct), lambda n, c: (0, 0)),
            ],
            out_specs=pl.BlockSpec((nb, ct, HW), lambda n, c: (n, c, 0)),
            scratch_shapes=[
                pltpu.VMEM((Cin_p, HW + 2 * zp), mxu_dtype),   # zero-margined image
                pltpu.VMEM((9 * Cin_p, HW), mxu_dtype),        # im2col patch
            ],
        ),
        compiler_params=pltpu.CompilerParams(
            dimension_semantics=("parallel", "parallel"),
            vmem_limit_bytes=vmem_limit),
    )(x_flat, w2, g2, b2, gmat)

    # (N, Cout, H*W) -> (N, Cout, H, W): metadata-only split of the last dim.
    return out_flat.reshape(N, Cout, H, W)


def _reference(x_nchw, w_oihw, gamma, beta, *, num_groups=8, eps=1e-5):
    N, Cin, H, W = x_nchw.shape
    Cout = w_oihw.shape[0]
    y = lax.conv_general_dilated(
        x_nchw, w_oihw, window_strides=(1, 1), padding=((1, 1), (1, 1)),
        dimension_numbers=("NCHW", "OIHW", "NCHW"),
        precision=lax.Precision.HIGHEST)
    yr = y.reshape(N, num_groups, Cout // num_groups, H, W)
    mean = yr.mean(axis=(2, 3, 4), keepdims=True)
    var = ((yr - mean) ** 2).mean(axis=(2, 3, 4), keepdims=True)
    yn = ((yr - mean) / jnp.sqrt(var + eps)).reshape(N, Cout, H, W)
    yn = yn * gamma[None, :, None, None] + beta[None, :, None, None]
    return yn * jax.nn.sigmoid(yn)


if __name__ == "__main__":
    key = jax.random.PRNGKey(0)
    k_x, k_w, k_g, k_b = jax.random.split(key, 4)

    N, Cin, Cout, H, W = 2, 4, 16, 16, 16  # Cout divisible by 8 (GroupNorm groups)

    x = jax.random.normal(k_x, (N, Cin, H, W), jnp.float32)
    w = jax.random.normal(k_w, (Cout, Cin, 3, 3), jnp.float32) * 0.1  # conv, bias=False
    gamma = 1.0 + 0.1 * jax.random.normal(k_g, (Cout,), jnp.float32)  # gn.weight
    beta = 0.1 * jax.random.normal(k_b, (Cout,), jnp.float32)         # gn.bias

    fwd = jax.jit(conv_gn_drop_act)
    out = jax.block_until_ready(fwd(x, w, gamma, beta))

    # Reference applies the same bf16 quantization to the MXU operands as the
    # kernel (GN / SiLU stay f32 in both), so tolerances stay tight.
    xq = x.astype(jnp.bfloat16).astype(jnp.float32)
    wq = w.astype(jnp.bfloat16).astype(jnp.float32)
    ref = _reference(xq, wq, gamma, beta)

    assert out.shape == (N, Cout, H, W)
    err = jnp.max(jnp.abs(out - ref))
    assert jnp.allclose(out, ref, atol=5e-3, rtol=5e-3), f"max abs err {err}"

    print("KERNEL_OK")
</pallas_src>

<mosaic_0001>
module attributes {stable_mosaic.version = 11 : i64} {
  func.func @_conv_gn_act_kernel(%arg0: i32, %arg1: i32, %arg2: memref<1x4x256xbf16, #tpu.memory_space<vmem>>, %arg3: memref<16x144xbf16, #tpu.memory_space<vmem>>, %arg4: memref<16x1xf32, #tpu.memory_space<vmem>>, %arg5: memref<16x1xf32, #tpu.memory_space<vmem>>, %arg6: memref<16x16xf32, #tpu.memory_space<vmem>>, %arg7: memref<1x16x256xf32, #tpu.memory_space<vmem>>, %arg8: memref<16x512xbf16, #tpu.memory_space<vmem>>, %arg9: memref<144x256xbf16, #tpu.memory_space<vmem>>) attributes {dimension_semantics = [#tpu.dimension_semantics<parallel>, #tpu.dimension_semantics<parallel>], iteration_bounds = array<i64: 2, 1>, scalar_prefetch = 0 : i64, scratch_operands = 2 : i64, tpu.core_type = #tpu.core_type<tc>, window_params = [{transform_indices = @transform_0, window_bounds = array<i64: 1, 4, 256>}, {transform_indices = @transform_1, window_bounds = array<i64: 16, 144>}, {transform_indices = @transform_2, window_bounds = array<i64: 16, 1>}, {transform_indices = @transform_3, window_bounds = array<i64: 16, 1>}, {pipeline_mode = #tpu.pipeline_mode<synchronous>, transform_indices = @transform_4, window_bounds = array<i64: 16, 16>}, {transform_indices = @transform_5, window_bounds = array<i64: 1, 16, 256>}]} {
    %cst = arith.constant 0.000000e+00 : bf16
    %0 = vector.broadcast %cst : bf16 to vector<16x128xbf16>
    %c0 = arith.constant 0 : index
    %c0_0 = arith.constant 0 : index
    %1 = vector.load %arg8[%c0, %c0_0] : memref<16x512xbf16, #tpu.memory_space<vmem>>, vector<16x128xbf16>
    tpu.vector_store %arg8[%c0, %c0_0], %0 {strides = array<i32>} : memref<16x512xbf16, #tpu.memory_space<vmem>>, vector<16x128xbf16>,
    %cst_1 = arith.constant 0.000000e+00 : bf16
    %2 = vector.broadcast %cst_1 : bf16 to vector<16x128xbf16>
    %c0_2 = arith.constant 0 : index
    %c384 = arith.constant 384 : index
    %3 = vector.load %arg8[%c0_2, %c384] : memref<16x512xbf16, #tpu.memory_space<vmem>>, vector<16x128xbf16>
    tpu.vector_store %arg8[%c0_2, %c384], %2 {strides = array<i32>} : memref<16x512xbf16, #tpu.memory_space<vmem>>, vector<16x128xbf16>,
    %cst_3 = arith.constant 0.000000e+00 : bf16
    %4 = vector.broadcast %cst_3 : bf16 to vector<12x256xbf16>
    %c4 = arith.constant 4 : index
    %c128 = arith.constant 128 : index
    %5 = vector.load %arg8[%c4, %c128] : memref<16x512xbf16, #tpu.memory_space<vmem>>, vector<12x256xbf16>
    tpu.vector_store %arg8[%c4, %c128], %4 {strides = array<i32>} : memref<16x512xbf16, #tpu.memory_space<vmem>>, vector<12x256xbf16>,
    %c0_4 = arith.constant 0 : index
    %c0_5 = arith.constant 0 : index
    %6 = vector.load %arg3[%c0_4, %c0_5] : memref<16x144xbf16, #tpu.memory_space<vmem>>, vector<16x144xbf16>
    %c0_6 = arith.constant 0 : index
    %c0_7 = arith.constant 0 : index
    %7 = vector.load %arg4[%c0_6, %c0_7] : memref<16x1xf32, #tpu.memory_space<vmem>>, vector<16x1xf32>
    %c0_8 = arith.constant 0 : index
    %c0_9 = arith.constant 0 : index
    %8 = vector.load %arg5[%c0_8, %c0_9] : memref<16x1xf32, #tpu.memory_space<vmem>>, vector<16x1xf32>
    %c0_10 = arith.constant 0 : index
    %c0_11 = arith.constant 0 : index
    %9 = vector.load %arg6[%c0_10, %c0_11] : memref<16x16xf32, #tpu.memory_space<vmem>>, vector<16x16xf32>
    %10 = tpu.iota {dimensions = array<i32: 1>} : vector<16x256xi32>
    %c16_i32 = arith.constant 16 : i32
    %c0_i32 = arith.constant 0 : i32
    %11 = arith.cmpi eq, %c16_i32, %c0_i32 : i32
    %c1_i32 = arith.constant 1 : i32
    %12 = arith.select %11, %c1_i32, %c16_i32 : i32
    %13 = vector.broadcast %12 : i32 to vector<16x256xi32>
    %14 = arith.remsi %10, %13 : vector<16x256xi32>
    %c0_i32_12 = arith.constant 0 : i32
    %15 = vector.broadcast %c0_i32_12 : i32 to vector<16x256xi32>
    %16 = arith.cmpi ne, %14, %15 : vector<16x256xi32>
    %c0_i32_13 = arith.constant 0 : i32
    %17 = vector.broadcast %c0_i32_13 : i32 to vector<16x256xi32>
    %18 = arith.cmpi slt, %14, %17 : vector<16x256xi32>
    %c0_i32_14 = arith.constant 0 : i32
    %19 = arith.cmpi slt, %12, %c0_i32_14 : i32
    %20 = vector.broadcast %19 : i1 to vector<16x256xi1>
    %21 = vector.broadcast %20 : vector<16x256xi1> to vector<16x256xi1>
    %22 = arith.xori %18, %21 : vector<16x256xi1>
    %23 = arith.andi %22, %16 : vector<16x256xi1>
    %24 = vector.broadcast %12 : i32 to vector<16x256xi32>
    %25 = arith.addi %14, %24 : vector<16x256xi32>
    %26 = arith.select %23, %25, %14 : vector<16x256xi1>, vector<16x256xi32>
    %c15_i32 = arith.constant 15 : i32
    %27 = vector.broadcast %c15_i32 : i32 to vector<16x256xi32>
    %28 = arith.cmpi slt, %26, %27 : vector<16x256xi32>
    %c0_i32_15 = arith.constant 0 : i32
    %29 = vector.broadcast %c0_i32_15 : i32 to vector<16x256xi32>
    %30 = arith.cmpi sgt, %26, %29 : vector<16x256xi32>
    %c0_i32_16 = arith.constant 0 : i32
    %31 = arith.index_cast %c0_i32_16 : i32 to index
    %c0_17 = arith.constant 0 : index
    %c0_18 = arith.constant 0 : index
    %32 = vector.load %arg2[%31, %c0_17, %c0_18] : memref<1x4x256xbf16, #tpu.memory_space<vmem>>, vector<1x4x256xbf16>
    %33 = vector.shape_cast %32 : vector<1x4x256xbf16> to vector<4x256xbf16>
    %c0_19 = arith.constant 0 : index
    %c128_20 = arith.constant 128 : index
    %34 = vector.load %arg8[%c0_19, %c128_20] : memref<16x512xbf16, #tpu.memory_space<vmem>>, vector<4x256xbf16>
    tpu.vector_store %arg8[%c0_19, %c128_20], %33 {strides = array<i32>} : memref<16x512xbf16, #tpu.memory_space<vmem>>, vector<4x256xbf16>,
    %c0_21 = arith.constant 0 : index
    %c111 = arith.constant 111 : index
    %35 = vector.load %arg8[%c0_21, %c111] : memref<16x512xbf16, #tpu.memory_space<vmem>>, vector<16x256xbf16>
    %cst_22 = arith.constant 0.000000e+00 : bf16
    %36 = vector.broadcast %cst_22 : bf16 to vector<16x256xbf16>
    %37 = arith.select %30, %35, %36 : vector<16x256xi1>, vector<16x256xbf16>
    %c0_23 = arith.constant 0 : index
    %c0_24 = arith.constant 0 : index
    %38 = vector.load %arg9[%c0_23, %c0_24] : memref<144x256xbf16, #tpu.memory_space<vmem>>, vector<16x256xbf16>
    tpu.vector_store %arg9[%c0_23, %c0_24], %37 {strides = array<i32>} : memref<144x256xbf16, #tpu.memory_space<vmem>>, vector<16x256xbf16>,
    %c0_25 = arith.constant 0 : index
    %c112 = arith.constant 112 : index
    %39 = vector.load %arg8[%c0_25, %c112] : memref<16x512xbf16, #tpu.memory_space<vmem>>, vector<16x256xbf16>
    %c16 = arith.constant 16 : index
    %c0_26 = arith.constant 0 : index
    %40 = vector.load %arg9[%c16, %c0_26] : memref<144x256xbf16, #tpu.memory_space<vmem>>, vector<16x256xbf16>
    tpu.vector_store %arg9[%c16, %c0_26], %39 {strides = array<i32>} : memref<144x256xbf16, #tpu.memory_space<vmem>>, vector<16x256xbf16>,
    %c0_27 = arith.constant 0 : index
    %c113 = arith.constant 113 : index
    %41 = vector.load %arg8[%c0_27, %c113] : memref<16x512xbf16, #tpu.memory_space<vmem>>, vector<16x256xbf16>
    %cst_28 = arith.constant 0.000000e+00 : bf16
    %42 = vector.broadcast %cst_28 : bf16 to vector<16x256xbf16>
    %43 = arith.select %28, %41, %42 : vector<16x256xi1>, vector<16x256xbf16>
    %c32 = arith.constant 32 : index
    %c0_29 = arith.constant 0 : index
    %44 = vector.load %arg9[%c32, %c0_29] : memref<144x256xbf16, #tpu.memory_space<vmem>>, vector<16x256xbf16>
    tpu.vector_store %arg9[%c32, %c0_29], %43 {strides = array<i32>} : memref<144x256xbf16, #tpu.memory_space<vmem>>, vector<16x256xbf16>,
    %c0_30 = arith.constant 0 : index
    %c127 = arith.constant 127 : index
    %45 = vector.load %arg8[%c0_30, %c127] : memref<16x512xbf16, #tpu.memory_space<vmem>>, vector<16x256xbf16>
    %cst_31 = arith.constant 0.000000e+00 : bf16
    %46 = vector.broadcast %cst_31 : bf16 to vector<16x256xbf16>
    %47 = arith.select %30, %45, %46 : vector<16x256xi1>, vector<16x256xbf16>
    %c48 = arith.constant 48 : index
    %c0_32 = arith.constant 0 : index
    %48 = vector.load %arg9[%c48, %c0_32] : memref<144x256xbf16, #tpu.memory_space<vmem>>, vector<16x256xbf16>
    tpu.vector_store %arg9[%c48, %c0_32], %47 {strides = array<i32>} : memref<144x256xbf16, #tpu.memory_space<vmem>>, vector<16x256xbf16>,
    %c0_33 = arith.constant 0 : index
    %c128_34 = arith.constant 128 : index
    %49 = vector.load %arg8[%c0_33, %c128_34] : memref<16x512xbf16, #tpu.memory_space<vmem>>, vector<16x256xbf16>
    %c64 = arith.constant 64 : index
    %c0_35 = arith.constant 0 : index
    %50 = vector.load %arg9[%c64, %c0_35] : memref<144x256xbf16, #tpu.memory_space<vmem>>, vector<16x256xbf16>
    tpu.vector_store %arg9[%c64, %c0_35], %49 {strides = array<i32>} : memref<144x256xbf16, #tpu.memory_space<vmem>>, vector<16x256xbf16>,
    %c0_36 = arith.constant 0 : index
    %c129 = arith.constant 129 : index
    %51 = vector.load %arg8[%c0_36, %c129] : memref<16x512xbf16, #tpu.memory_space<vmem>>, vector<16x256xbf16>
    %cst_37 = arith.constant 0.000000e+00 : bf16
    %52 = vector.broadcast %cst_37 : bf16 to vector<16x256xbf16>
    %53 = arith.select %28, %51, %52 : vector<16x256xi1>, vector<16x256xbf16>
    %c80 = arith.constant 80 : index
    %c0_38 = arith.constant 0 : index
    %54 = vector.load %arg9[%c80, %c0_38] : memref<144x256xbf16, #tpu.memory_space<vmem>>, vector<16x256xbf16>
    tpu.vector_store %arg9[%c80, %c0_38], %53 {strides = array<i32>} : memref<144x256xbf16, #tpu.memory_space<vmem>>, vector<16x256xbf16>,
    %c0_39 = arith.constant 0 : index
    %c143 = arith.constant 143 : index
    %55 = vector.load %arg8[%c0_39, %c143] : memref<16x512xbf16, #tpu.memory_space<vmem>>, vector<16x256xbf16>
    %cst_40 = arith.constant 0.000000e+00 : bf16
    %56 = vector.broadcast %cst_40 : bf16 to vector<16x256xbf16>
    %57 = arith.select %30, %55, %56 : vector<16x256xi1>, vector<16x256xbf16>
    %c96 = arith.constant 96 : index
    %c0_41 = arith.constant 0 : index
    %58 = vector.load %arg9[%c96, %c0_41] : memref<144x256xbf16, #tpu.memory_space<vmem>>, vector<16x256xbf16>
    tpu.vector_store %arg9[%c96, %c0_41], %57 {strides = array<i32>} : memref<144x256xbf16, #tpu.memory_space<vmem>>, vector<16x256xbf16>,
    %c0_42 = arith.constant 0 : index
    %c144 = arith.constant 144 : index
    %59 = vector.load %arg8[%c0_42, %c144] : memref<16x512xbf16, #tpu.memory_space<vmem>>, vector<16x256xbf16>
    %c112_43 = arith.constant 112 : index
    %c0_44 = arith.constant 0 : index
    %60 = vector.load %arg9[%c112_43, %c0_44] : memref<144x256xbf16, #tpu.memory_space<vmem>>, vector<16x256xbf16>
    tpu.vector_store %arg9[%c112_43, %c0_44], %59 {strides = array<i32>} : memref<144x256xbf16, #tpu.memory_space<vmem>>, vector<16x256xbf16>,
    %c0_45 = arith.constant 0 : index
    %c145 = arith.constant 145 : index
    %61 = vector.load %arg8[%c0_45, %c145] : memref<16x512xbf16, #tpu.memory_space<vmem>>, vector<16x256xbf16>
    %cst_46 = arith.constant 0.000000e+00 : bf16
    %62 = vector.broadcast %cst_46 : bf16 to vector<16x256xbf16>
    %63 = arith.select %28, %61, %62 : vector<16x256xi1>, vector<16x256xbf16>
    %c128_47 = arith.constant 128 : index
    %c0_48 = arith.constant 0 : index
    %64 = vector.load %arg9[%c128_47, %c0_48] : memref<144x256xbf16, #tpu.memory_space<vmem>>, vector<16x256xbf16>
    tpu.vector_store %arg9[%c128_47, %c0_48], %63 {strides = array<i32>} : memref<144x256xbf16, #tpu.memory_space<vmem>>, vector<16x256xbf16>,
    %c0_49 = arith.constant 0 : index
    %c0_50 = arith.constant 0 : index
    %65 = vector.load %arg9[%c0_49, %c0_50] : memref<144x256xbf16, #tpu.memory_space<vmem>>, vector<144x256xbf16>
    %cst_51 = arith.constant dense<0.000000e+00> : vector<16x256xf32>
    %66 = tpu.matmul %6, %65, %cst_51 {dimension_numbers = #tpu.dot_dimension_numbers<[1], [0], [0], [1], [0, 0, 1, 1], [], []>} : vector<16x144xbf16>, vector<144x256xbf16>, vector<16x256xf32> -> vector<16x256xf32>
    %cst_52 = arith.constant dense<0.000000e+00> : vector<16xf32>
    %67 = vector.multi_reduction <add>, %66, %cst_52 [1] : vector<16x256xf32> to vector<16xf32>
    %68 = vector.shape_cast %67 : vector<16xf32> to vector<16x1xf32>
    %cst_53 = arith.constant dense<0.000000e+00> : vector<16x1xf32>
    %69 = tpu.matmul %9, %68, %cst_53 {dimension_numbers = #tpu.dot_dimension_numbers<[1], [0], [0], [1], [0, 0, 1, 1], [], []>} : vector<16x16xf32>, vector<16x1xf32>, vector<16x1xf32> -> vector<16x1xf32>
    %cst_54 = arith.constant 0.001953125 : f32
    %70 = vector.broadcast %cst_54 : f32 to vector<16x1xf32>
    %71 = arith.mulf %69, %70 : vector<16x1xf32>
    %72 = vector.broadcast %71 : vector<16x1xf32> to vector<16x256xf32>
    %73 = arith.subf %66, %72 : vector<16x256xf32>
    %74 = arith.mulf %73, %73 : vector<16x256xf32>
    %cst_55 = arith.constant dense<0.000000e+00> : vector<16xf32>
    %75 = vector.multi_reduction <add>, %74, %cst_55 [1] : vector<16x256xf32> to vector<16xf32>
    %76 = vector.shape_cast %75 : vector<16xf32> to vector<16x1xf32>
    %cst_56 = arith.constant dense<0.000000e+00> : vector<16x1xf32>
    %77 = tpu.matmul %9, %76, %cst_56 {dimension_numbers = #tpu.dot_dimension_numbers<[1], [0], [0], [1], [0, 0, 1, 1], [], []>} : vector<16x16xf32>, vector<16x1xf32>, vector<16x1xf32> -> vector<16x1xf32>
    %cst_57 = arith.constant 0.001953125 : f32
    %78 = vector.broadcast %cst_57 : f32 to vector<16x1xf32>
    %79 = arith.mulf %77, %78 : vector<16x1xf32>
    %cst_58 = arith.constant 9.99999974E-6 : f32
    %80 = vector.broadcast %cst_58 : f32 to vector<16x1xf32>
    %81 = arith.addf %79, %80 : vector<16x1xf32>
    %82 = math.rsqrt %81 : vector<16x1xf32>
    %83 = arith.mulf %82, %7 : vector<16x1xf32>
    %84 = vector.broadcast %83 : vector<16x1xf32> to vector<16x256xf32>
    %85 = arith.mulf %73, %84 : vector<16x256xf32>
    %86 = vector.broadcast %8 : vector<16x1xf32> to vector<16x256xf32>
    %87 = arith.addf %85, %86 : vector<16x256xf32>
    %88 = arith.negf %87 : vector<16x256xf32>
    %89 = math.exp %88 : vector<16x256xf32>
    %cst_59 = arith.constant 1.000000e+00 : f32
    %90 = vector.broadcast %cst_59 : f32 to vector<16x256xf32>
    %91 = arith.addf %90, %89 : vector<16x256xf32>
    %92 = arith.divf %90, %91 : vector<16x256xf32>
    %93 = arith.mulf %87, %92 : vector<16x256xf32>
    %94 = arith.index_cast %c0_i32_16 : i32 to index
    %c0_60 = arith.constant 0 : index
    %c0_61 = arith.constant 0 : index
    %95 = vector.load %arg7[%94, %c0_60, %c0_61] : memref<1x16x256xf32, #tpu.memory_space<vmem>>, vector<1x16x256xf32>
    %96 = vector.shape_cast %95 : vector<1x16x256xf32> to vector<16x256xf32>
    %97 = vector.shape_cast %93 : vector<16x256xf32> to vector<1x16x256xf32>
    tpu.vector_store %arg7[%94, %c0_60, %c0_61], %97 {strides = array<i32>} : memref<1x16x256xf32, #tpu.memory_space<vmem>>, vector<1x16x256xf32>,
    %c1_i32_62 = arith.constant 1 : i32
    return
  }
  func.func @transform_0(%arg0: i32, %arg1: i32) -> (i32, i32, i32) {
    %c0_i32 = arith.constant 0 : i32
    %c0_i32_0 = arith.constant 0 : i32
    %c0_i32_1 = arith.constant 0 : i32
    return %arg0, %c0_i32, %c0_i32_0 : i32, i32, i32
  }
  func.func @transform_1(%arg0: i32, %arg1: i32) -> (i32, i32) {
    %c0_i32 = arith.constant 0 : i32
    %c0_i32_0 = arith.constant 0 : i32
    return %arg1, %c0_i32 : i32, i32
  }
  func.func @transform_2(%arg0: i32, %arg1: i32) -> (i32, i32) {
    %c0_i32 = arith.constant 0 : i32
    %c0_i32_0 = arith.constant 0 : i32
    return %arg1, %c0_i32 : i32, i32
  }
  func.func @transform_3(%arg0: i32, %arg1: i32) -> (i32, i32) {
    %c0_i32 = arith.constant 0 : i32
    %c0_i32_0 = arith.constant 0 : i32
    return %arg1, %c0_i32 : i32, i32
  }
  func.func @transform_4(%arg0: i32, %arg1: i32) -> (i32, i32) {
    %c0_i32 = arith.constant 0 : i32
    %c0_i32_0 = arith.constant 0 : i32
    %c0_i32_1 = arith.constant 0 : i32
    return %c0_i32, %c0_i32_0 : i32, i32
  }
  func.func @transform_5(%arg0: i32, %arg1: i32) -> (i32, i32, i32) {
    %c0_i32 = arith.constant 0 : i32
    %c0_i32_0 = arith.constant 0 : i32
    return %arg0, %arg1, %c0_i32 : i32, i32, i32
  }
}

</mosaic_0001>

<bundles_post_ra>
// kernel: conv_gn_drop_act.1
= control target key start
LH: loop header
LB: loop body
LE: loop exit
PB: predicated region body
PF: predicated region fallthrough
CT: control target
= control target key end

     0   :  { %s1262_s18 = smov 0   ;;  %s1264_s19 = smov 0   ;;  %s1409_s0 = inlined_call_operand.vmem [shape: bf16[2,4,256], index: 0, kind: input, shape index: {}]   ;;  %s1410_s1 = inlined_call_operand.vmem [shape: bf16[16,144], index: 1, kind: input, shape index: {}]   ;;  %s1411_s2 = inlined_call_operand.vmem [shape: f32[16,1], index: 2, kind: input, shape index: {}]   ;;  %s1412_s3 = inlined_call_operand.vmem [shape: f32[16,1], index: 3, kind: input, shape index: {}]   ;;  %s1413_s4 = inlined_call_operand.vmem [shape: f32[16,16], index: 4, kind: input, shape index: {}]   ;;  %s1414_s5 = inlined_call_operand.vmem [shape: f32[2,16,256], index: 5, kind: output, shape index: {}]  }
   0x1   :  { %s1266_s20 = smov 0  }
   0x2 LB: > { %s27_s21 = sadd.s32 1, %s1217_s19  ;;  %p1090_p0 = scmp.ge.s32.totalorder %s1221_s20, 1  ;;  %s1221_s20 = sphi %s1266_s20, %s15_s20   ;;  %s1217_s19 = sphi %s1264_s19, %s1416_s19   ;;  %s1213_s18 = sphi %s1262_s18, %s1415_s18  }
   0x3   : > { %p29_p1 = scmp.ge.s32.totalorder %s27_s21, 2  ;;  %p235_p2 = scmp.lt.s32.totalorder %s1221_s20, 3 }
   0x5   : > { %s1418_s21 = smov (%p29_p1, %s27_s21), 0  ;;  %p236_p3 = pnand %p1090_p0, %p235_p2 }
   0x6   : > { %v334_v0 = vlaneseq (!%p236_p3)  ;;  %v1223_v1 = vmov (!%p236_p3), 0   ;;  %p284_p4 = scmp.lt.s32.totalorder (!%p236_p3), %s1213_s18, 1  ;;  %s1224_s26 = smov (!%p236_p3), 113   ;;  %vm396_vm6 = vcmask (!%p236_p3), 908288   ;;  %vm456_vm10 = vcmask (!%p236_p3), 924672  }
   0x7   : > { %239 = sbr.rel (%p236_p3) target bundleno = 1552 (0x610), region = 40  ;;  %324 = vst [vmem:[#allocation2 + $0x8] sm:$0xfc] (!%p236_p3), %v1223_v1  ;;  %325 = vst [vmem:[#allocation2 + $0x10] sm:$0xfc] (!%p236_p3), %v1223_v1  ;;  %1175 = vset.pattern.permute.xlu1 (!%p236_p3), %v1223_v1  ;;  %1174 = vset.pattern.permute.xlu0 (!%p236_p3), %v1223_v1  ;;  %s1225_s27 = smov (!%p236_p3), 111  }
   0x8   : > { %v335_v2 = vand.u32 (!%p236_p3), 127, %v334_v0  ;;  %v385_v3 = vshrl.u32 (!%p236_p3), %v334_v0, 7  ;;  %s1226_s28 = smov (!%p236_p3), 127   ;;  %s1227_s29 = smov (!%p236_p3), 1   ;;  %vm487_vm12 = vcmask (!%p236_p3), 1039360  }
   0x9   : > { %s1228_s30 = smov (!%p236_p3), 15   ;;  %s1229_s6 = smov (!%p236_p3), 17   ;;  %v1178_v47 = vld [vmem:[%s1410_s1 + $0x4] ss:$8 sps:$4 sm:$0xff] (!%p236_p3)  }
   0xa   : > { %v336_v4 = vadd.s32 (!%p236_p3), 128, %v335_v2  ;;  %v341_v5 = vand.u32 (!%p236_p3), 15, %v335_v2  ;;  %v386_v7 = vsub.s32 (!%p236_p3), 0, %v385_v3  ;;  %v390_v8 = vsub.s32 (!%p236_p3), 4, %v385_v3  ;;  %s1230_s7 = smov (!%p236_p3), 16   ;;  %s1231_s10 = smov (!%p236_p3), 112  }
   0xc   : > { %v348_v6 = vand.u32 (!%p236_p3), 15, %v336_v4  ;;  %vm361_vm0 = vcmp.lt.s32.totalorder (!%p236_p3), %v341_v5, 15  ;;  %vm363_vm1 = vcmp.gt.s32.totalorder (!%p236_p3), %v341_v5, 0 }
   0xe   : > { %s1420_s18 = smov (!%p284_p4, %s1213_s18), 1  ;;  %vm362_vm2 = vcmp.lt.s32.totalorder %v348_v6, 15  ;;  %vm364_vm3 = vcmp.gt.s32.totalorder %v348_v6, 0 }
   0xf   : > { %s1109_s22 = sshll.u32 %s1420_s18, 2  ;;  %vm442_vm4 = vmpackc.low %vm362_vm2, %vm361_vm0  ;;  %vm504_vm0 = vcmask 7168  }
  0x10   : > { %s288_s25 = scalar_lea.vmem %s1409_s0, %s1109_s22  ;;  %v443_v10 = vsel %vm442_vm4, 65537, %v1223_v1  ;;  %vm382_vm5 = vmpackc.low %vm364_vm3, %vm363_vm1  ;;  %vm473_vm1 = vcmask 121856  }
  0x11   : > { %v1095_v9 = vld.sshfl [vmem:[%s288_s25] sm:$0x33 pattern:$0x76325410]  ;;  %v447_v12 = vrot.slane %v443_v10, %v386_v7  ;;  %v383_v13 = vsel %vm382_vm5, 65537, %v1223_v1  ;;  %v451_v15 = vrot.slane %v443_v10, %v390_v8  ;;  %vm413_vm5 = vcmask 138240  }
  0x12   : > { %377 = vst [vmem:[#allocation2 + $0x8] sm:$0x3] %v1095_v9  ;;  %v374_v11 = vcombine.high %v1095_v9, %v1095_v9  ;;  %v387_v14 = vrot.slane %v383_v13, %v386_v7  ;;  %v391_v16 = vrot.slane %v383_v13, %v390_v8 }
  0x13   : > { %452 = vrot.lane.b32.xlu1 %v447_v12, %s1224_s26 }
  0x14   : > { %378 = vst [vmem:[#allocation2 + $0x10] sm:$0x3] %v374_v11  ;;  %392 = vrot.lane.b32.xlu0 %v387_v14, %s1225_s27 }
  0x17   : > { %454 = vrot.lane.b32.xlu1 %v451_v15, %s1224_s26 }
  0x18   : > { %394 = vrot.lane.b32.xlu0 %v391_v16, %s1225_s27 }
  0x19   : > { %v1302_v17 = vld [vmem:[#allocation2 + $0x8] sm:$0xff] }
  0x1b   : > { %485 = vrot.lane.b32.xlu1 %v391_v16, %s1226_s28  ;;  %v1304_v18 = vld [vmem:[#allocation2 + $0x10] sm:$0xff] }
  0x1c   : > { %483 = vrot.lane.b32.xlu0 %v387_v14, %s1226_s28 }
  0x1f   : > { %520 = vrot.lane.b32.xlu1 %v451_v15, %s1227_s29 }
  0x20   : > { %518 = vrot.lane.b32.xlu0 %v447_v12, %s1227_s29 }
  0x23   : > { %549 = vrot.lane.b32.xlu1 %v391_v16, %s1228_s30 }
  0x24   : > { %547 = vrot.lane.b32.xlu0 %v387_v14, %s1228_s30 }
  0x27   : > { %597 = vrot.lane.b32.xlu1 %v451_v15, %s1229_s6 }
  0x28   : > { %595 = vrot.lane.b32.xlu0 %v447_v12, %s1229_s6 }
  0x2b   : > { %428 = vrot.lane.b32.xlu1 %v1302_v17, %s1230_s7 }
  0x2c   : > { %430 = vrot.lane.b32.xlu0 %v1304_v18, %s1230_s7 }
  0x2f   : > { %426 = vrot.lane.b32.xlu1 %v1223_v1, %s1230_s7 }
  0x30   : > { %407 = vrot.lane.b32.xlu0 %v1223_v1, %s1229_s6 }
  0x34   : > { %467 = vrot.lane.b32.xlu0 %v1223_v1, %s1228_s30 }
  0x85   : > { %v453_v19 = vpop.permute.xlu1 %452 }
  0x86   : > { %v393_v20 = vpop.permute.xlu0 %392 }
  0x89   : > { %v455_v21 = vpop.permute.xlu1 %454 }
  0x8a   : > { %v395_v22 = vpop.permute.xlu0 %394  ;;  %vm460_vm7 = vcmp.ne.s16.totalorder %v455_v21, 0  ;;  %v457_v29 = vsel %vm456_vm10, %v453_v19, %v455_v21 }
  0x8b   : > { %v397_v23 = vsel %vm396_vm6, %v393_v20, %v395_v22  ;;  %vm400_vm8 = vcmp.ne.s16.totalorder %v395_v22, 0  ;;  %v463_v26 = vsel %vm460_vm7, %v1304_v18, 0  ;;  %vm459_vm13 = vcmp.ne.s16.totalorder %v457_v29, 0 }
  0x8c   : > { %v403_v24 = vsel %vm400_vm8, %v1304_v18, 0  ;;  %vm399_vm9 = vcmp.ne.s16.totalorder %v397_v23, 0  ;;  %v462_v34 = vsel %vm459_vm13, %v1302_v17, 0  ;;  %vm432_vm8 = vcmask 130048  }
  0x8d   : > { %411 = vrot.lane.b32.xlu1 %v403_v24, %s1229_s6  ;;  %v486_v25 = vpop.permute.xlu1 %485  ;;  %v402_v28 = vsel %vm399_vm9, %v1302_v17, 0  ;;  %1098 = vmatprep.mubr.msk.bf16.mxu0 %vm432_vm8, %v1178_v47 }
  0x8e   : > { %v484_v27 = vpop.permute.xlu0 %483  ;;  %vm491_vm11 = vcmp.ne.s16.totalorder %v486_v25, 0  ;;  %409 = vrot.lane.b32.xlu0 %v402_v28, %s1229_s6 }
  0x8f   : > { %v488_v30 = vsel %vm487_vm12, %v484_v27, %v486_v25  ;;  %v494_v31 = vsel %vm491_vm11, %v1304_v18, 0  ;;  %vm585_vm11 = vcmask 916480  }
  0x90   : > { %vm490_vm14 = vcmp.ne.s16.totalorder %v488_v30, 0 }
  0x91   : > { %471 = vrot.lane.b32.xlu1 %v463_v26, %s1228_s30  ;;  %v521_v32 = vpop.permute.xlu1 %520  ;;  %v493_v35 = vsel %vm490_vm14, %v1302_v17, 0  ;;  %v1176_v26 = vld [vmem:[%s1410_s1] ss:$8 sps:$4 sm:$0xff]  }
  0x92   : > { %v519_v33 = vpop.permute.xlu0 %518  ;;  %502 = vrot.lane.b32.xlu0 %v494_v31, %s1227_s29 }
  0x93   : > { %vm523_vm15 = vcmp.ne.s16.totalorder %v519_v33, 0  ;;  %v522_v39 = vsel %vm504_vm0, %v519_v33, %v521_v32  ;;  %v332_v33 = vld [vmem:[%s1413_s4] sm:$0xff] }
  0x94   : > { %v526_v38 = vsel %vm523_vm15, %v1302_v17, 0  ;;  %vm524_vm3 = vcmp.ne.s16.totalorder %v522_v39, 0  ;;  %1123 = vmatprep.mubr.msk.f32.mxu1 %vm432_vm8, %v332_v33 }
  0x95   : > { %498 = vrot.lane.b32.xlu1 %v1223_v1, %s1227_s29  ;;  %v550_v36 = vpop.permute.xlu1 %549  ;;  %v527_v44 = vsel %vm524_vm3, %v1304_v18, 0 }
  0x96   : > { %v548_v37 = vpop.permute.xlu0 %547  ;;  %469 = vrot.lane.b32.xlu0 %v462_v34, %s1228_s30 }
  0x97   : > { %vm552_vm2 = vcmp.ne.s16.totalorder %v548_v37, 0  ;;  %v551_v40 = vsel %vm473_vm1, %v548_v37, %v550_v36  ;;  %v333_v37 = vld [vmem:[%s1413_s4 + $0x8] sm:$0xff] }
  0x98   : > { %v555_v41 = vsel %vm552_vm2, %v1302_v17, 0  ;;  %vm553_vm4 = vcmp.ne.s16.totalorder %v551_v40, 0 }
  0x99   : > { %500 = vrot.lane.b32.xlu1 %v493_v35, %s1227_s29  ;;  %v598_v42 = vpop.permute.xlu1 %597  ;;  %v556_v45 = vsel %vm553_vm4, %v1304_v18, 0  ;;  %s1110_s29 = sshll.u32 %s1420_s18, 5 }
  0x9a   : > { %532 = vrot.lane.b32.xlu0 %v526_v38, %s1226_s28  ;;  %v596_v43 = vpop.permute.xlu0 %595  ;;  %s317_s7 = scalar_lea.vmem %s1414_s5, %s1110_s29 }
  0x9b   : > { %v599_v46 = vsel %vm413_vm5, %v596_v43, %v598_v42  ;;  %vm600_vm9 = vcmp.ne.s16.totalorder %v596_v43, 0 }
  0x9c   : > { %vm601_vm7 = vcmp.ne.s16.totalorder %v599_v46, 0  ;;  %v603_v49 = vsel %vm600_vm9, %v1302_v17, 0 }
  0x9d   : > { %536 = vrot.lane.b32.xlu1 %v1223_v1, %s1226_s28  ;;  %v604_v48 = vsel %vm601_vm7, %v1304_v18, 0  ;;  %v429_v50 = vpop.permute.xlu1 %428 }
  0x9e   : > { %565 = vrot.lane.b32.xlu0 %v1223_v1, %s1224_s26  ;;  %v431_v51 = vpop.permute.xlu0 %430 }
  0x9f   : > { %v434_v60 = vsel %vm432_vm8, %v429_v50, %v431_v51 }
  0xa1   : > { %561 = vrot.lane.b32.xlu1 %v555_v41, %s1224_s26  ;;  %v427_v52 = vpop.permute.xlu1 %426 }
  0xa2   : > { %534 = vrot.lane.b32.xlu0 %v527_v44, %s1226_s28  ;;  %v408_v53 = vpop.permute.xlu0 %407  ;;  %v433_v63 = vsel %vm432_vm8, %v427_v52, %v429_v50 }
  0xa5   : > { %563 = vrot.lane.b32.xlu1 %v556_v45, %s1224_s26 }
  0xa6   : > { %581 = vrot.lane.b32.xlu0 %v1304_v18, %s1231_s10  ;;  %v468_v54 = vpop.permute.xlu0 %467 }
  0xa9   : > { %583 = vrot.lane.b32.xlu1 %v1223_v1, %s1231_s10 }
  0xaa   : > { %579 = vrot.lane.b32.xlu0 %v1302_v17, %s1231_s10 }
  0xad   : > { %611 = vrot.lane.b32.xlu1 %v604_v48, %s1225_s27 }
  0xae   : > { %613 = vrot.lane.b32.xlu0 %v1223_v1, %s1225_s27 }
  0xb1   : > { %609 = vrot.lane.b32.xlu1 %v603_v49, %s1225_s27 }
  0xff   : > { %v412_v55 = vpop.permute.xlu1 %411 }
 0x100   : > { %v410_v56 = vpop.permute.xlu0 %409 }
 0x101   : > { %v415_v58 = vsel %vm413_vm5, %v410_v56, %v412_v55  ;;  %v414_v59 = vsel %vm413_vm5, %v408_v53, %v410_v56 }
 0x102   : > { %652 = vmatprep.subr.bf16.mxu0 %v415_v58 }
 0x103   : > { %v472_v57 = vpop.permute.xlu1 %471  ;;  %653 = vmatpush1.bf16.msra.mxu0 %v414_v59 }
 0x104   : > { %v503_v61 = vpop.permute.xlu0 %502  ;;  %654 = vmatprep.subr.bf16.mxu0 %v434_v60 }
 0x107   : > { %v499_v62 = vpop.permute.xlu1 %498  ;;  %655 = vmatpush1.bf16.msra.mxu0 %v433_v63 }
 0x108   : > { %v470_v0 = vpop.permute.xlu0 %469 }
 0x109   : > { %v475_v2 = vsel %vm473_vm1, %v470_v0, %v472_v57  ;;  %v474_v3 = vsel %vm473_vm1, %v468_v54, %v470_v0  ;;  %v330_v54 = vld [vmem:[%s1412_s3] sm:$0xff]  ;;  %v329_v0 = vld [vmem:[%s1411_s2 + $0x8] sm:$0xff] }
 0x10a   : > { %656 = vmatprep.subr.bf16.mxu0 %v475_v2 }
 0x10b   : > { %v501_v1 = vpop.permute.xlu1 %500  ;;  %657 = vmatpush1.bf16.msra.mxu0 %v474_v3 }
 0x10c   : > { %v506_v4 = vsel %vm504_vm0, %v501_v1, %v503_v61  ;;  %v533_v5 = vpop.permute.xlu0 %532  ;;  %v505_v7 = vsel %vm504_vm0, %v499_v62, %v501_v1  ;;  %v328_v1 = vld [vmem:[%s1411_s2] sm:$0xff] }
 0x10d   : > { %658 = vmatprep.subr.bf16.mxu0 %v506_v4 }
 0x10f   : > { %v537_v6 = vpop.permute.xlu1 %536  ;;  %659 = vmatpush1.bf16.msra.mxu0 %v505_v7 }
 0x110   : > { %v566_v8 = vpop.permute.xlu0 %565  ;;  %660 = vmatprep.subr.bf16.mxu0 %v1304_v18 }
 0x113   : > { %v562_v9 = vpop.permute.xlu1 %561  ;;  %661 = vmatpush1.bf16.msra.mxu0 %v1302_v17 }
 0x114   : > { %v535_v10 = vpop.permute.xlu0 %534 }
 0x115   : > { %v539_v12 = vsel %vm487_vm12, %v535_v10, %v537_v6  ;;  %v538_v13 = vsel %vm487_vm12, %v533_v5, %v535_v10  ;;  %v331_v6 = vld [vmem:[%s1412_s3 + $0x8] sm:$0xff] }
 0x116   : > { %662 = vmatprep.subr.bf16.mxu0 %v539_v12 }
 0x117   : > { %v564_v11 = vpop.permute.xlu1 %563  ;;  %663 = vmatpush1.bf16.msra.mxu0 %v538_v13 }
 0x118   : > { %v568_v14 = vsel %vm456_vm10, %v564_v11, %v566_v8  ;;  %v582_v15 = vpop.permute.xlu0 %581  ;;  %v567_v19 = vsel %vm456_vm10, %v562_v9, %v564_v11 }
 0x119   : > { %664 = vmatprep.subr.bf16.mxu0 %v568_v14 }
 0x11b   : > { %v584_v16 = vpop.permute.xlu1 %583  ;;  %665 = vmatpush1.bf16.msra.mxu0 %v567_v19 }
 0x11c   : > { %v587_v18 = vsel %vm585_vm11, %v582_v15, %v584_v16  ;;  %v580_v20 = vpop.permute.xlu0 %579 }
 0x11d   : > { %666 = vmatprep.subr.bf16.mxu0 %v587_v18  ;;  %v586_v21 = vsel %vm585_vm11, %v580_v20, %v582_v15 }
 0x11f   : > { %v612_v17 = vpop.permute.xlu1 %611  ;;  %667 = vmatpush1.bf16.msra.mxu0 %v586_v21 }
 0x120   : > { %v614_v22 = vpop.permute.xlu0 %613 }
 0x121   : > { %v616_v24 = vsel %vm396_vm6, %v612_v17, %v614_v22 }
 0x122   : > { %668 = vmatprep.subr.bf16.mxu0 %v616_v24 }
 0x123   : > { %v610_v23 = vpop.permute.xlu1 %609 }
 0x124   : > { %v615_v25 = vsel %vm396_vm6, %v610_v23, %v612_v17 }
 0x125   : > { %669 = vmatpush1.bf16.msra.mxu0 %v615_v25 }
 0x128   : > { %685 = vmatmul.mubr.bf16.vlgmr.msra.gmra.mrb[0].mxu0 %v1176_v26 }
 0x1fb   : > { %v686_v27 = vpop.f32.mrb[0].mxu0 }
 0x1fc   : > { %v688_v28 = vpop.f32.mrb[1].mxu0 }
 0x1fd   : > { %v690_v29 = vpop.f32.mrb[2].mxu0  ;;  %v695_v30 = vadd.f32 %v688_v28, %v686_v27 }
 0x1fe   : > { %v692_v31 = vpop.f32.mrb[3].mxu0 }
 0x1ff   : > { %v698_v32 = vadd.f32 %v692_v31, %v690_v29  ;;  %696 = vadd.xlane.f32.xlu0 %v695_v30 }
 0x201   : > { %699 = vadd.xlane.f32.xlu1 %v698_v32 }
 0x28c   : > { %v697_v34 = vpop.xlane.xlu0 %696 }
 0x28e   : > { %v700_v35 = vpop.xlane.xlu1 %699 }
 0x28f   : > { %v1133_v36 = vpack.c.bf16 %v700_v35, %v697_v34 }
 0x291   : > { %1134 = vmatprep.subr.bf16.mxu1 %v1133_v36 }
 0x292   : > { %1136 = vmatpush3.bf16.msra.mxu1 %v1133_v36 }
 0x295   : > { %1124 = vmatmul.mubr.msk.f32.vlgmr.msra.gmra.mrb[0].mxu1 %vm432_vm8, %v333_v37 }
 0x296   : > { %1130 = vmatprep.mubr.msk.f32.mxu1 %vm432_vm8, %v332_v33 }
 0x368   : > { %v1125_v38 = vpop.f32.mrb[0].mxu1 }
 0x369   : > { %v783_v39 = vmul.f32 0.001953125, %v1125_v38  ;;  %v773_v40 = vpop.f32.mrb[1].mxu1 }
 0x36a   : > { %v782_v41 = vmul.f32 0.001953125, %v773_v40 }
 0x36b   : > { %791 = vperm.xlu1 %1175, %v783_v39  }
 0x36c   : > { %786 = vperm.xlu0 %1174, %v782_v41  }
 0x3ea   : > { %v792_v42 = vpop.permute.xlu1 %791 }
 0x3eb   : > { %v796_v43 = vsub.f32 %v690_v29, %v792_v42  ;;  %v797_v44 = vsub.f32 %v692_v31, %v792_v42  ;;  %v787_v45 = vpop.permute.xlu0 %786 }
 0x3ec   : > { %v794_v46 = vsub.f32 %v686_v27, %v787_v45  ;;  %v795_v47 = vsub.f32 %v688_v28, %v787_v45 }
 0x3ed   : > { %v800_v48 = vmul.f32 %v796_v43, %v796_v43  ;;  %v801_v49 = vmul.f32 %v797_v44, %v797_v44 }
 0x3ee   : > { %v798_v50 = vmul.f32 %v794_v46, %v794_v46  ;;  %v799_v51 = vmul.f32 %v795_v47, %v795_v47 }
 0x3ef   : > { %v805_v52 = vadd.f32 %v801_v49, %v800_v48 }
 0x3f0   : > { %v802_v53 = vadd.f32 %v799_v51, %v798_v50 }
 0x3f1   : > { %806 = vadd.xlane.f32.xlu0 %v805_v52 }
 0x3f2   : > { %803 = vadd.xlane.f32.xlu1 %v802_v53 }
 0x403   : > { %907 = vperm.xlu1 %1175, %v330_v54  }
 0x47e   : > { %v807_v55 = vpop.xlane.xlu0 %806 }
 0x47f   : > { %v804_v56 = vpop.xlane.xlu1 %803 }
 0x480   : > { %v1137_v57 = vpack.c.bf16 %v807_v55, %v804_v56 }
 0x482   : > { %1138 = vmatprep.subr.bf16.mxu1 %v1137_v57 }
 0x483   : > { %1140 = vmatpush3.bf16.msra.mxu1 %v1137_v57  ;;  %v908_v7 = vpop.permute.xlu1 %907 }
 0x486   : > { %1131 = vmatmul.mubr.msk.f32.vlgmr.msra.gmra.mrb[2].mxu1 %vm432_vm8, %v333_v37 }
 0x559   : > { %v1132_v58 = vpop.f32.mrb[2].mxu1 }
 0x55a   : > { %v884_v59 = vmul.f32 0.001953125, %v1132_v58  ;;  %v874_v60 = vpop.f32.mrb[3].mxu1 }
 0x55b   : > { %v883_v61 = vmul.f32 0.001953125, %v874_v60 }
 0x55c   : > { %v886_v62 = vadd.f32 1e-05, %v884_v59 }
 0x55d   : > { %v885_v63 = vadd.f32 1e-05, %v883_v61 }
 0x55e   : > { %1179 = vrsqrt.f32 %v886_v62 }
 0x55f   : > { %1181 = vrsqrt.f32 %v885_v63 }
 0x568   : > { %v1180_v2 = vpop.eup %1179 }
 0x569   : > { %v1182_v3 = vpop.eup %1181  ;;  %v890_v4 = vmul.f32 %v1180_v2, %v329_v0 }
 0x56a   : > { %v889_v5 = vmul.f32 %v1182_v3, %v328_v1 }
 0x56b   : > { %898 = vperm.xlu0 %1174, %v890_v4  }
 0x56c   : > { %893 = vperm.xlu1 %1175, %v889_v5  }
 0x570   : > { %912 = vperm.xlu1 %1175, %v331_v6  }
 0x5ea   : > { %v899_v8 = vpop.permute.xlu0 %898 }
 0x5eb   : > { %v894_v9 = vpop.permute.xlu1 %893  ;;  %v903_v12 = vmul.f32 %v899_v8, %v796_v43  ;;  %v904_v13 = vmul.f32 %v899_v8, %v797_v44 }
 0x5ec   : > { %v901_v10 = vmul.f32 %v894_v9, %v794_v46  ;;  %v902_v11 = vmul.f32 %v894_v9, %v795_v47 }
 0x5ee   : > { %v915_v14 = vadd.f32 %v908_v7, %v901_v10  ;;  %v916_v15 = vadd.f32 %v908_v7, %v902_v11 }
 0x5ef   : > { %v913_v16 = vpop.permute.xlu1 %912 }
 0x5f0   : > { %v1103_v19 = vmul.f32 -1.442695, %v915_v14  ;;  %v1104_v18 = vmul.f32 -1.442695, %v916_v15  ;;  %v917_v20 = vadd.f32 %v913_v16, %v903_v12  ;;  %v918_v17 = vadd.f32 %v913_v16, %v904_v13 }
 0x5f2   : > { %1183 = vpow2.f32 %v1103_v19  ;;  %v1105_v21 = vmul.f32 -1.442695, %v917_v20  ;;  %v1106_v22 = vmul.f32 -1.442695, %v918_v17 }
 0x5f3   : > { %1185 = vpow2.f32 %v1104_v18 }
 0x5f4   : > { %1187 = vpow2.f32 %v1105_v21 }
 0x5f5   : > { %1189 = vpow2.f32 %v1106_v22 }
 0x5fc   : > { %v1184_v23 = vpop.eup %1183 }
 0x5fd   : > { %v1186_v24 = vpop.eup %1185  ;;  %v931_v25 = vadd.f32 1.0, %v1184_v23 }
 0x5fe   : > { %v1188_v26 = vpop.eup %1187  ;;  %v932_v27 = vadd.f32 1.0, %v1186_v24 }
 0x5ff   : > { %v1190_v28 = vpop.eup %1189  ;;  %1191 = vrcp.f32 %v931_v25  ;;  %v933_v29 = vadd.f32 1.0, %v1188_v26 }
 0x600   : > { %1193 = vrcp.f32 %v932_v27  ;;  %v934_v30 = vadd.f32 1.0, %v1190_v28 }
 0x601   : > { %1195 = vrcp.f32 %v933_v29 }
 0x602   : > { %1197 = vrcp.f32 %v934_v30 }
 0x609   : > { %v1192_v31 = vpop.eup %1191 }
 0x60a   : > { %v1194_v32 = vpop.eup %1193  ;;  %v943_v33 = vmul.f32 %v1192_v31, %v915_v14 }
 0x60b   : > { %v1196_v34 = vpop.eup %1195  ;;  %v944_v35 = vmul.f32 %v1194_v32, %v916_v15 }
 0x60c   : > { %v1198_v36 = vpop.eup %1197  ;;  %947 = vst [vmem:[%s317_s7] sm:$0xff] %v943_v33  ;;  %v945_v37 = vmul.f32 %v1196_v34, %v917_v20 }
 0x60d   : > { %948 = vst [vmem:[%s317_s7 + $0x8] sm:$0xff] %v944_v35  ;;  %v946_v38 = vmul.f32 %v1198_v36, %v918_v17 }
 0x60e   : > { %949 = vst [vmem:[%s317_s7 + $0x10] sm:$0xff] %v945_v37 }
 0x60f   : > { %950 = vst [vmem:[%s317_s7 + $0x18] sm:$0xff] %v946_v38 }
 0x610 PF: > { %s15_s20 = sadd.s32 1, %s1221_s20   ;;  %s1415_s18 = smov %s1217_s19 }
 0x611   : > { %p12_p5 = scmp.ge.s32.totalorder %s15_s20, 4   ;;  %s1416_s19 = smov %s1418_s21 }
 0x613   :  { %14 = sbr.rel (!%p12_p5) target bundleno = 2 (0x2), region = 79 }

</bundles_post_ra>
